<compile_context>
chip_gen: v5e
topology: v5e:2x2
jax: 0.10.0
libtpu: 0.0.40
codegen_flags: <defaults>
</compile_context>

<pallas_src>
import functools

import jax
import jax.numpy as jnp
import numpy as np
from jax.experimental import pallas as pl
from jax.experimental.pallas import tpu as pltpu


def _gauss_attn_kernel(std, seg_ref, q_ref, o_ref):
    # seg_ref : SMEM (B,) int32        (scalar prefetch: per-batch num_chunks)
    # q_ref   : VMEM (TB, 5, TD)       (this step's batch block / D tile of Q_emb)
    # o_ref   : VMEM (TB, max_chunk, TD)
    tb = q_ref.shape[0]
    M = o_ref.shape[1]
    b0 = pl.program_id(0) * tb
    inv_std = 1.0 / float(std)

    # Lane-dense index planes: window position k (5) on sublanes, chunk index m on lanes.
    k_i = jax.lax.broadcasted_iota(jnp.int32, (5, M), 0)
    m_i = jax.lax.broadcasted_iota(jnp.int32, (5, M), 1)
    k_f = k_i.astype(jnp.float32)
    m_f = m_i.astype(jnp.float32)
    first_pat = (k_i == 0).astype(jnp.float32)   # column pattern [1,0,0,0,0]
    last_pat = (k_i == 4).astype(jnp.float32)    # column pattern [0,0,0,0,1]
    m_row = m_i[0:1, :]                          # (1, M) chunk index

    def body(t, carry):
        n = seg_ref[b0 + t]                      # int32 scalar: num_chunks for batch b0+t
        nf = n.astype(jnp.float32)
        denom = jnp.maximum(nf - 1.0, 1.0)       # n == 1 handled explicitly below
        mu = m_f * (4.0 / denom)                 # (5, M)
        z = (k_f - mu) * inv_std
        e = jnp.exp(-0.5 * z * z)                # Gaussian up to a constant (cancels in min-max)

        rows = [e[k:k + 1, :] for k in range(5)]
        e_min = functools.reduce(jnp.minimum, rows)    # (1, M), pure VPU
        e_max = functools.reduce(jnp.maximum, rows)
        # Clamp: rows past num_chunks can underflow to all-zero e -> avoid 0/0 NaN.
        w = (e - e_min) / jnp.maximum(e_max - e_min, 1e-30)

        is_first = m_row == 0
        is_last = m_row == (n - 1)
        in_range = m_row < n
        w = jnp.where(is_last, last_pat, w)                             # row n-1 -> [0,0,0,0,1]
        w = jnp.where(is_first, jnp.where(n == 1, 1.0, first_pat), w)   # row 0 -> [1,0..] / ones
        w = jnp.where(in_range, w, 0.0)                                 # rows >= n -> 0

        wt = w.T                                 # (M, 5): single small relayout
        q = q_ref[t].astype(jnp.float32)         # (5, TD), f32 accumulation
        # 5-term VPU contraction (K=5 would waste the MXU contraction width).
        acc = wt[:, 0:1] * q[0:1, :]
        for k in range(1, 5):
            acc = acc + wt[:, k:k + 1] * q[k:k + 1, :]
        o_ref[t] = acc.astype(o_ref.dtype)
        return carry

    jax.lax.fori_loop(0, tb, body, 0)


def gaussian_cross_attn(segment_len, max_chunk, q_emb, std, out_dtype=None):
    """segment_len: (B,) int, max_chunk: python int, q_emb: (B, 5, D) -> (B, max_chunk, D)."""
    B, K, D = q_emb.shape
    assert K == 5, "Gaussian_cross_attn uses a fixed window of 5"
    max_chunk = int(max_chunk)
    out_dtype = q_emb.dtype if out_dtype is None else out_dtype

    # D tile: keep the full lane dim when modest; otherwise a 128-aligned divisor so
    # double-buffered output blocks stay small (v7x has only 64 MiB VMEM).
    td = D
    if D > 1024 and D % 128 == 0:
        for cand in (512, 256, 128):
            if D % cand == 0:
                td = cand
                break

    # Batch block: target ~2 MiB output tiles (good HBM-roofline territory), but keep
    # at least 2 steps on the parallel batch axis so 2-TensorCore parts stay busy.
    blk_bytes = max_chunk * td * np.dtype(out_dtype).itemsize
    tb = max(1, (2 * 1024 * 1024) // max(1, blk_bytes))
    if B >= 2:
        tb = min(tb, B // 2)
    tb = max(1, min(tb, B))
    while B % tb:
        tb -= 1

    grid = (B // tb, D // td)
    kernel = functools.partial(_gauss_attn_kernel, float(std))

    return pl.pallas_call(
        kernel,
        out_shape=jax.ShapeDtypeStruct((B, max_chunk, D), out_dtype),
        grid_spec=pltpu.PrefetchScalarGridSpec(
            num_scalar_prefetch=1,
            grid=grid,
            in_specs=[
                pl.BlockSpec((tb, K, td), lambda i, j, seg: (i, 0, j)),
            ],
            out_specs=pl.BlockSpec((tb, max_chunk, td), lambda i, j, seg: (i, 0, j)),
        ),
        compiler_params=pltpu.CompilerParams(
            dimension_semantics=("parallel", "parallel"),
            vmem_limit_bytes=32 * 1024 * 1024,
        ),
    )(segment_len.astype(jnp.int32), q_emb)


def _reference(segment_len, max_chunk, q_emb, std):
    """Pure numpy reference mirroring the PyTorch module."""
    segment_len = np.asarray(segment_len)
    q_emb = np.asarray(q_emb, dtype=np.float32)
    B, _, D = q_emb.shape
    out = np.zeros((B, max_chunk, D), dtype=np.float32)
    for b in range(B):
        n = int(segment_len[b])
        frame = np.zeros((max_chunk, 5), dtype=np.float32)
        if n == 1:
            frame[:1] = 1.0
        else:
            rows = []
            for i in range(n):
                mu = i * 4.0 / (n - 1)
                x = np.arange(5, dtype=np.float64)
                pdf = np.exp(-0.5 * ((x - mu) / std) ** 2) / (std * np.sqrt(2 * np.pi))
                m1, m2 = pdf.min(), pdf.max()
                rows.append((pdf - m1) / (m2 - m1))
            rows = np.array(rows, dtype=np.float32)
            rows[0] = np.array([1.0, 0.0, 0.0, 0.0, 0.0], dtype=np.float32)
            rows[-1] = np.array([0.0, 0.0, 0.0, 0.0, 1.0], dtype=np.float32)
            frame[:n] = rows
        out[b] = frame @ q_emb[b]
    return out


if __name__ == "__main__":
    key = jax.random.PRNGKey(0)
    B, D, max_chunk = 2, 32, 16
    std = 1.0

    q_emb = jax.random.normal(key, (B, 5, D), dtype=jnp.float32)
    segment_len = jnp.array([1, 7], dtype=jnp.int32)  # per-batch number of chunks

    out = gaussian_cross_attn(segment_len, max_chunk, q_emb, std)
    out = jax.block_until_ready(out)

    ref = _reference(np.asarray(segment_len), max_chunk, np.asarray(q_emb), std)
    np.testing.assert_allclose(np.asarray(out), ref, atol=1e-4, rtol=1e-4)

    print("KERNEL_OK")
</pallas_src>

<mosaic_0001>
module attributes {stable_mosaic.version = 11 : i64} {
  func.func @_gauss_attn_kernel(%arg0: i32, %arg1: i32, %arg2: memref<2xi32, #tpu.memory_space<smem>>, %arg3: memref<1x5x32xf32, #tpu.memory_space<vmem>>, %arg4: memref<1x16x32xf32, #tpu.memory_space<vmem>>) attributes {dimension_semantics = [#tpu.dimension_semantics<parallel>, #tpu.dimension_semantics<parallel>], iteration_bounds = array<i64: 2, 1>, scalar_prefetch = 1 : i64, scratch_operands = 0 : i64, tpu.core_type = #tpu.core_type<tc>, window_params = [{transform_indices = @transform_0, window_bounds = array<i64: 1, 5, 32>}, {transform_indices = @transform_1, window_bounds = array<i64: 1, 16, 32>}]} {
    %c1_i32 = arith.constant 1 : i32
    %0 = arith.muli %arg0, %c1_i32 : i32
    %1 = tpu.iota {dimensions = array<i32: 0>} : vector<5x16xi32>
    %2 = tpu.iota {dimensions = array<i32: 1>} : vector<5x16xi32>
    %3 = arith.sitofp %1 : vector<5x16xi32> to vector<5x16xf32>
    %4 = arith.sitofp %2 : vector<5x16xi32> to vector<5x16xf32>
    %c0_i32 = arith.constant 0 : i32
    %5 = vector.broadcast %c0_i32 : i32 to vector<5x16xi32>
    %6 = arith.cmpi eq, %1, %5 : vector<5x16xi32>
    %7 = arith.extui %6 : vector<5x16xi1> to vector<5x16xi32>
    %8 = arith.sitofp %7 : vector<5x16xi32> to vector<5x16xf32>
    %c4_i32 = arith.constant 4 : i32
    %9 = vector.broadcast %c4_i32 : i32 to vector<5x16xi32>
    %10 = arith.cmpi eq, %1, %9 : vector<5x16xi32>
    %11 = arith.extui %10 : vector<5x16xi1> to vector<5x16xi32>
    %12 = arith.sitofp %11 : vector<5x16xi32> to vector<5x16xf32>
    %13 = vector.extract_strided_slice %2 {offsets = [0, 0], sizes = [1, 16], strides = [1, 1]} : vector<5x16xi32> to vector<1x16xi32>
    %c0_i32_0 = arith.constant 0 : i32
    %14 = arith.addi %0, %c0_i32_0 : i32
    %15 = arith.index_cast %14 : i32 to index
    %16 = memref.load %arg2[%15] : memref<2xi32, #tpu.memory_space<smem>>
    %17 = arith.sitofp %16 : i32 to f32
    %cst = arith.constant 1.000000e+00 : f32
    %18 = arith.subf %17, %cst : f32
    %cst_1 = arith.constant 1.000000e+00 : f32
    %19 = arith.maximumf %18, %cst_1 : f32
    %cst_2 = arith.constant 4.000000e+00 : f32
    %20 = arith.divf %cst_2, %19 : f32
    %21 = vector.broadcast %20 : f32 to vector<5x16xf32>
    %22 = arith.mulf %4, %21 : vector<5x16xf32>
    %23 = arith.subf %3, %22 : vector<5x16xf32>
    %cst_3 = arith.constant 1.000000e+00 : f32
    %24 = vector.broadcast %cst_3 : f32 to vector<5x16xf32>
    %25 = arith.mulf %23, %24 : vector<5x16xf32>
    %cst_4 = arith.constant -5.000000e-01 : f32
    %26 = vector.broadcast %cst_4 : f32 to vector<5x16xf32>
    %27 = arith.mulf %26, %25 : vector<5x16xf32>
    %28 = arith.mulf %27, %25 : vector<5x16xf32>
    %29 = math.exp %28 : vector<5x16xf32>
    %30 = vector.extract_strided_slice %29 {offsets = [0, 0], sizes = [1, 16], strides = [1, 1]} : vector<5x16xf32> to vector<1x16xf32>
    %31 = vector.extract_strided_slice %29 {offsets = [1, 0], sizes = [1, 16], strides = [1, 1]} : vector<5x16xf32> to vector<1x16xf32>
    %32 = vector.extract_strided_slice %29 {offsets = [2, 0], sizes = [1, 16], strides = [1, 1]} : vector<5x16xf32> to vector<1x16xf32>
    %33 = vector.extract_strided_slice %29 {offsets = [3, 0], sizes = [1, 16], strides = [1, 1]} : vector<5x16xf32> to vector<1x16xf32>
    %34 = vector.extract_strided_slice %29 {offsets = [4, 0], sizes = [1, 16], strides = [1, 1]} : vector<5x16xf32> to vector<1x16xf32>
    %35 = arith.minimumf %30, %31 : vector<1x16xf32>
    %36 = arith.minimumf %35, %32 : vector<1x16xf32>
    %37 = arith.minimumf %36, %33 : vector<1x16xf32>
    %38 = arith.minimumf %37, %34 : vector<1x16xf32>
    %39 = arith.maximumf %30, %31 : vector<1x16xf32>
    %40 = arith.maximumf %39, %32 : vector<1x16xf32>
    %41 = arith.maximumf %40, %33 : vector<1x16xf32>
    %42 = arith.maximumf %41, %34 : vector<1x16xf32>
    %43 = vector.broadcast %38 : vector<1x16xf32> to vector<5x16xf32>
    %44 = arith.subf %29, %43 : vector<5x16xf32>
    %45 = arith.subf %42, %38 : vector<1x16xf32>
    %cst_5 = arith.constant 1.000000e-30 : f32
    %46 = vector.broadcast %cst_5 : f32 to vector<1x16xf32>
    %47 = arith.maximumf %45, %46 : vector<1x16xf32>
    %48 = vector.broadcast %47 : vector<1x16xf32> to vector<5x16xf32>
    %49 = arith.divf %44, %48 : vector<5x16xf32>
    %c0_i32_6 = arith.constant 0 : i32
    %50 = vector.broadcast %c0_i32_6 : i32 to vector<1x16xi32>
    %51 = arith.cmpi eq, %13, %50 : vector<1x16xi32>
    %c1_i32_7 = arith.constant 1 : i32
    %52 = arith.subi %16, %c1_i32_7 : i32
    %53 = vector.broadcast %52 : i32 to vector<1x16xi32>
    %54 = arith.cmpi eq, %13, %53 : vector<1x16xi32>
    %55 = vector.broadcast %16 : i32 to vector<1x16xi32>
    %56 = arith.cmpi slt, %13, %55 : vector<1x16xi32>
    %57 = vector.shape_cast %54 : vector<1x16xi1> to vector<1x16xi1>
    %58 = vector.broadcast %57 : vector<1x16xi1> to vector<5x16xi1>
    %59 = arith.select %58, %12, %49 : vector<5x16xi1>, vector<5x16xf32>
    %c1_i32_8 = arith.constant 1 : i32
    %60 = arith.cmpi eq, %16, %c1_i32_8 : i32
    %cst_9 = arith.constant 1.000000e+00 : f32
    %61 = vector.broadcast %cst_9 : f32 to vector<5x16xf32>
    %62 = arith.select %60, %61, %8 : vector<5x16xf32>
    %63 = vector.shape_cast %51 : vector<1x16xi1> to vector<1x16xi1>
    %64 = vector.broadcast %63 : vector<1x16xi1> to vector<5x16xi1>
    %65 = arith.select %64, %62, %59 : vector<5x16xi1>, vector<5x16xf32>
    %cst_10 = arith.constant 0.000000e+00 : f32
    %66 = vector.shape_cast %56 : vector<1x16xi1> to vector<1x16xi1>
    %67 = vector.broadcast %66 : vector<1x16xi1> to vector<5x16xi1>
    %68 = vector.broadcast %cst_10 : f32 to vector<5x16xf32>
    %69 = arith.select %67, %65, %68 : vector<5x16xi1>, vector<5x16xf32>
    %70 = tpu.transpose %69, [1, 0] : vector<5x16xf32> -> vector<16x5xf32>
    %71 = arith.index_cast %c0_i32_0 : i32 to index
    %c0 = arith.constant 0 : index
    %c0_11 = arith.constant 0 : index
    %72 = vector.load %arg3[%71, %c0, %c0_11] : memref<1x5x32xf32, #tpu.memory_space<vmem>>, vector<1x5x32xf32>
    %73 = vector.shape_cast %72 : vector<1x5x32xf32> to vector<5x32xf32>
    %74 = vector.extract_strided_slice %70 {offsets = [0, 0], sizes = [16, 1], strides = [1, 1]} : vector<16x5xf32> to vector<16x1xf32>
    %75 = vector.extract_strided_slice %73 {offsets = [0, 0], sizes = [1, 32], strides = [1, 1]} : vector<5x32xf32> to vector<1x32xf32>
    %76 = vector.broadcast %74 : vector<16x1xf32> to vector<16x32xf32>
    %77 = vector.broadcast %75 : vector<1x32xf32> to vector<16x32xf32>
    %78 = arith.mulf %76, %77 : vector<16x32xf32>
    %79 = vector.extract_strided_slice %70 {offsets = [0, 1], sizes = [16, 1], strides = [1, 1]} : vector<16x5xf32> to vector<16x1xf32>
    %80 = vector.extract_strided_slice %73 {offsets = [1, 0], sizes = [1, 32], strides = [1, 1]} : vector<5x32xf32> to vector<1x32xf32>
    %81 = vector.broadcast %79 : vector<16x1xf32> to vector<16x32xf32>
    %82 = vector.broadcast %80 : vector<1x32xf32> to vector<16x32xf32>
    %83 = arith.mulf %81, %82 : vector<16x32xf32>
    %84 = arith.addf %78, %83 : vector<16x32xf32>
    %85 = vector.extract_strided_slice %70 {offsets = [0, 2], sizes = [16, 1], strides = [1, 1]} : vector<16x5xf32> to vector<16x1xf32>
    %86 = vector.extract_strided_slice %73 {offsets = [2, 0], sizes = [1, 32], strides = [1, 1]} : vector<5x32xf32> to vector<1x32xf32>
    %87 = vector.broadcast %85 : vector<16x1xf32> to vector<16x32xf32>
    %88 = vector.broadcast %86 : vector<1x32xf32> to vector<16x32xf32>
    %89 = arith.mulf %87, %88 : vector<16x32xf32>
    %90 = arith.addf %84, %89 : vector<16x32xf32>
    %91 = vector.extract_strided_slice %70 {offsets = [0, 3], sizes = [16, 1], strides = [1, 1]} : vector<16x5xf32> to vector<16x1xf32>
    %92 = vector.extract_strided_slice %73 {offsets = [3, 0], sizes = [1, 32], strides = [1, 1]} : vector<5x32xf32> to vector<1x32xf32>
    %93 = vector.broadcast %91 : vector<16x1xf32> to vector<16x32xf32>
    %94 = vector.broadcast %92 : vector<1x32xf32> to vector<16x32xf32>
    %95 = arith.mulf %93, %94 : vector<16x32xf32>
    %96 = arith.addf %90, %95 : vector<16x32xf32>
    %97 = vector.extract_strided_slice %70 {offsets = [0, 4], sizes = [16, 1], strides = [1, 1]} : vector<16x5xf32> to vector<16x1xf32>
    %98 = vector.extract_strided_slice %73 {offsets = [4, 0], sizes = [1, 32], strides = [1, 1]} : vector<5x32xf32> to vector<1x32xf32>
    %99 = vector.broadcast %97 : vector<16x1xf32> to vector<16x32xf32>
    %100 = vector.broadcast %98 : vector<1x32xf32> to vector<16x32xf32>
    %101 = arith.mulf %99, %100 : vector<16x32xf32>
    %102 = arith.addf %96, %101 : vector<16x32xf32>
    %103 = arith.index_cast %c0_i32_0 : i32 to index
    %c0_12 = arith.constant 0 : index
    %c0_13 = arith.constant 0 : index
    %104 = vector.load %arg4[%103, %c0_12, %c0_13] : memref<1x16x32xf32, #tpu.memory_space<vmem>>, vector<1x16x32xf32>
    %105 = vector.shape_cast %104 : vector<1x16x32xf32> to vector<16x32xf32>
    %106 = vector.shape_cast %102 : vector<16x32xf32> to vector<1x16x32xf32>
    tpu.vector_store %arg4[%103, %c0_12, %c0_13], %106 {strides = array<i32>} : memref<1x16x32xf32, #tpu.memory_space<vmem>>, vector<1x16x32xf32>,
    %c1_i32_14 = arith.constant 1 : i32
    return
  }
  func.func @transform_0(%arg0: i32, %arg1: i32, %arg2: memref<2xi32, #tpu.memory_space<smem>>) -> (i32, i32, i32) {
    %c0_i32 = arith.constant 0 : i32
    %c0_i32_0 = arith.constant 0 : i32
    return %arg0, %c0_i32, %arg1 : i32, i32, i32
  }
  func.func @transform_1(%arg0: i32, %arg1: i32, %arg2: memref<2xi32, #tpu.memory_space<smem>>) -> (i32, i32, i32) {
    %c0_i32 = arith.constant 0 : i32
    %c0_i32_0 = arith.constant 0 : i32
    return %arg0, %c0_i32, %arg1 : i32, i32, i32
  }
}

</mosaic_0001>

<bundles_post_ra>
// kernel: tpu_custom_call.1
= control target key start
LH: loop header
LB: loop body
LE: loop exit
PB: predicated region body
PF: predicated region fallthrough
CT: control target
= control target key end

     0   :  { %s631_s12 = smov [#allocation3]   ;;  %s775_s0 = inlined_call_operand.vmem [shape: s32[2], index: 0, kind: input, shape index: {}]   ;;  %s776_s1 = inlined_call_operand.vmem [shape: f32[2,5,32], index: 1, kind: input, shape index: {}]   ;;  %s777_s2 = inlined_call_operand.hbm [shape: f32[2,16,32], index: 2, kind: output, shape index: {}]  }
   0x1   :  { %s8_s11 = sshll.u32 %s775_s0, 4  ;;  %s9_s11 = int_to_ptr.vmem [resolvable:$true] %s8_s11 }
   0x2   :  { %11 = dma.vmem_to_smem %s9_s11, 16, %s631_s12, [#allocation2] }
   0x3   :  { %601 = dma.done.wait [#allocation2], 16 }
   0x4   :  { %602 = vsyncadd [#allocation2], 4294967280 }
   0x5   :  { %14 = sfence }
   0x6   :  { %15 = vsyncpa [#allocation5], 0 }
   0x7   :  { %17 = vsyncpa [#allocation5 + $0x1], 0  ;;  %s659_s13 = smov 0   ;;  %s661_s14 = smov 0  }
   0x8   :  { %s663_s15 = smov 0   ;;  %s665_s16 = smov 0  }
   0x9   :  { %s667_s17 = smov 0   ;;  %s669_s18 = smov 0  }
   0xa LB: > { %s436_s0 = sadd.s32 4294967295, %s629_s18   ;;  %s437_s19 = sadd.s32 4294967294, %s629_s18   ;;  %s629_s18 = sphi %s669_s18, %s23_s18   ;;  %s625_s17 = sphi %s667_s17, %s784_s17   ;;  %s621_s16 = sphi %s665_s16, %s783_s16   ;;  %s617_s15 = sphi %s663_s15, %s782_s15   ;;  %s613_s14 = sphi %s661_s14, %s781_s14   ;;  %s609_s13 = sphi %s659_s13, %s780_s13  }
   0xb   : > { %s35_s20 = sadd.s32 1, %s625_s17  ;;  %s72_s21 = sadd.s32 1, %s617_s15 }
   0xc   : > { %p37_p0 = scmp.ge.s32.totalorder %s35_s20, 2  ;;  %p82_p1 = scmp.ne.s32.totalorder %s617_s15, %s613_s14 }
   0xd   : > { %p83_p2 = scmp.eq.s32.totalorder %s436_s0, 1  ;;  %p88_p3 = scmp.ne.s32.totalorder %s613_s14, %s609_s13 }
   0xe   : > { %s786_s20 = smov (%p37_p0, %s35_s20), 0  ;;  %p89_p5 = scmp.eq.s32.totalorder %s437_s19, 1 }
   0xf   : > { %p699_p4 = por %p83_p2, %p82_p1  ;;  %s67_s23 = ssub.s32 %s625_s17, %s786_s20 }
  0x10   : > { %p440_p6 = scmp.ge.s32.totalorder %s629_s18, 1  ;;  %p70_p7 = scmp.eq.s32.totalorder %s67_s23, 0 }
  0x11   : > { %p706_p8 = por %p89_p5, %p88_p3  ;;  %p117_p9 = scmp.lt.s32.totalorder %s629_s18, 3 }
  0x12   : > { %s712_s25 = scalar_select %p70_p7, %s617_s15, %s72_s21  }
  0x13   : > { %p118_p10 = pnand %p440_p6, %p117_p9 }
  0x14   : > { %s715_s26 = sld [smem:[#allocation3 + %s621_s16]] (!%p118_p10)  ;;  %s632_s29 = smov (!%p118_p10), 1.0  }
  0x15   : > { %121 = sbr.rel (%p118_p10) target bundleno = 481 (0x1e1), region = 24  ;;  %p139_p12 = scmp.lt.s32.totalorder (!%p118_p10), %s621_s16, 1 }
  0x16   : > { %s136_s12 = sand.u32 (!%p118_p10), 1, %s613_s14   ;;  %s452_s21 = sshll.u32 (!%p118_p10), %s621_s16, 4 }
  0x17   : > { %s441_s0 = sshll.u32 (!%p118_p10), %s136_s12, 4 }
  0x18   : > { %s138_s19 = scalar_lea.vmem (!%p118_p10), [#allocation4], %s441_s0 }
  0x1a   : > { %s159_s27 = scvt.s32.f32 %s715_s26  ;;  %v146_v11 = vlaneseq  ;;  %v633_v33 = vmov 2   ;;  %v634_v34 = vmov 1   ;;  %p232_p11 = scmp.eq.s32.totalorder %s715_s26, 1  ;;  %v635_v50 = vmov 0.0  }
  0x1b   : > { %522 = vset.pattern.permute.xlu2 %v633_v33  ;;  %521 = vset.pattern.permute.xlu1 %v634_v34  ;;  %s446_s6 = sadd.s32 4294967295, %s715_s26  ;;  %v227_v55 = vstv %s715_s26  ;;  %v636_v63 = vmov 0   ;;  %vm341_vm14 = vcmask 261120  }
  0x1c   : > { %s445_s28 = sadd.f32 -1.0, %s159_s27  ;;  %v718_v12 = vand.u32 127, %v146_v11  ;;  %v147_v13 = vshrl.u32 %v146_v11, 7  ;;  %v225_v49 = vstv %s446_s6  ;;  %s357_s27 = scalar_lea.hbm %s777_s2, %s452_s21 }
  0x1d   : > { %s233_s5 = scalar_select %p232_p11, 1, 0 }
  0x1e   : > { %s161_s30 = smax.f32 %s632_s29, %s445_s28  ;;  %v151_v14 = vcvt.s32.f32 %v718_v12  ;;  %v150_v15 = vcvt.s32.f32 %v147_v13  ;;  %vm152_vm4 = vcmp.eq.s32.totalorder %v147_v13, 0  ;;  %vm155_vm6 = vcmp.eq.s32.totalorder %v147_v13, 4  ;;  %s358_s28 = sshll.u32 %s138_s19, 4  ;;  %s359_s28 = int_to_ptr.vmem [resolvable:$true] %s358_s28 }
  0x1f   : > { %v162_v0 = vstv %s161_s30  ;;  %v234_v44 = vstv %s233_s5  ;;  %v443_v51 = vsel %vm152_vm4, 1.0, %v635_v50  ;;  %v444_v56 = vsel %vm155_vm6, 1.0, %v635_v50  ;;  %s140_s7 = scalar_select %p139_p12, %s621_s16, 1 }
  0x20   : > { %531 = vrcp.f32 %v162_v0  ;;  %v174_v3 = vand.u32 2147483648, %v162_v0  ;;  %vm168_vm0 = vweird.f32 %v162_v0  ;;  %v172_v5 = vand.u32 2147483647, %v162_v0  ;;  %s360_s29 = sshll.u32 %s357_s27, 4  ;;  %s345_s16 = scalar_lea.sflag [#allocation5], %s136_s12  ;;  %s361_s29 = int_to_ptr.hbm [resolvable:$true] %s360_s29 }
  0x21   : > { %vm235_vm9 = vcmp.eq.s32.totalorder %v234_v44, 1  ;;  %vm226_vm11 = vcmp.eq.s32.totalorder %v718_v12, %v225_v49  ;;  %vm223_vm12 = vcmp.eq.s32.totalorder %v718_v12, 0  ;;  %vm228_vm13 = vcmp.lt.s32.totalorder %v718_v12, %v227_v55  ;;  %s442_s8 = sshll.u32 %s140_s7, 3  ;;  %s563_s30 = sshra.s32 %s361_s29, 4  ;;  %s564_s30 = int_to_ptr.hbm [resolvable:$true] %s563_s30 }
  0x22   : > { %v175_v7 = vor.u32 1.1754944e-38, %v174_v3  ;;  %vm173_vm3 = vcmp.eq.f32.partialorder %v172_v5, 8.507059e+37  ;;  %v236_v59 = vsel %vm235_vm9, 1.0, %v443_v51  ;;  %v638_v3 = vmov 4   ;;  %s145_s11 = scalar_lea.vmem %s776_s1, %s442_s8  ;;  %s569_s6 = scalar_lea.hbm %s777_s2, 32 }
  0x23   : > { %p570_p2 = scmp.lt.s32.totalorder %s564_s30, %s777_s2 }
  0x26   : > { %v532_v1 = vpop.eup %531 }
  0x27   : > { %v164_v2 = vmul.f32 %v532_v1, %v162_v0  ;;  %vm169_vm1 = vweird.f32 %v532_v1 }
  0x28   : > { %vm170_vm2 = vmor %vm168_vm0, %vm169_vm1 }
  0x29   : > { %v165_v4 = vsub.f32 1.0, %v164_v2  ;;  %v637_v2 = vmov 3  }
  0x2b   : > { %v166_v6 = vmul.f32 %v532_v1, %v165_v4 }
  0x2d   : > { %v167_v8 = vadd.f32 %v532_v1, %v166_v6 }
  0x2f   : > { %v171_v9 = vsel %vm170_vm2, %v532_v1, %v167_v8 }
  0x30   : > { %v176_v10 = vsel %vm173_vm3, %v175_v7, %v171_v9  ;;  %v275_v7 = vld [vmem:[%s145_s11] sm:$0x1f] }
  0x31   : > { %453 = vpush %v176_v10  ;;  %v286_v8 = vperm.slane %v275_v7, 0  ;;  %v297_v9 = vperm.slane %v275_v7, 1  ;;  %v310_v10 = vperm.slane %v275_v7, 2 }
  0x62   : > { %s454_s3 = spop %453 }
  0x63   : > { %s178_s4 = smul.f32 4.0, %s454_s3  ;;  %s565_s3 = scalar_lea.hbm %s564_s30, 16 }
  0x64   : > { %p566_p13 = scmp.ne.s32.totalorder %s564_s30, %s565_s3  ;;  %p571_p3 = scmp.lt.s32.totalorder %s569_s6, %s565_s3 }
  0x65   : > { %v179_v16 = vstv %s178_s4 }
  0x66   : > { %v180_v17 = vmul.f32 %v179_v16, %v151_v14  ;;  %v323_v14 = vperm.slane %v275_v7, 3  ;;  %p567_p0 = pnand %p566_p13, %p699_p4  ;;  %p572_p5 = por %p571_p3, %p570_p2 }
  0x68   : > { %v181_v18 = vsub.f32 %v150_v15, %v180_v17  ;;  %p568_p1 = pneg %p567_p0 }
  0x6a   : > { %v182_v19 = vmul.f32 -0.5, %v181_v18  ;;  %p573_p6 = pnand %p572_p5, %p568_p1 }
  0x6c   : > { %v183_v20 = vmul.f32 %v182_v19, %v181_v18  ;;  %v336_v18 = vperm.slane %v275_v7, 4 }
  0x6e   : > { %v184_v21 = vmul.f32 1.442695, %v183_v20 }
  0x70   : > { %533 = vpow2.f32 %v184_v21 }
  0x76   : > { %v534_v22 = vpop.eup %533 }
  0x77   : > { %v187_v23 = vrot.slane %v534_v22, 1  ;;  %v190_v25 = vrot.slane %v534_v22, 2  ;;  %v193_v28 = vrot.slane %v534_v22, 3  ;;  %v196_v30 = vrot.slane %v534_v22, 4 }
  0x79   : > { %v189_v24 = vmin.f32 %v534_v22, %v187_v23  ;;  %v199_v26 = vmax.f32 %v534_v22, %v187_v23 }
  0x7b   : > { %v192_v27 = vmin.f32 %v189_v24, %v190_v25  ;;  %v200_v29 = vmax.f32 %v199_v26, %v190_v25 }
  0x7d   : > { %v195_v31 = vmin.f32 %v192_v27, %v193_v28  ;;  %v201_v32 = vmax.f32 %v200_v29, %v193_v28 }
  0x7f   : > { %v198_v35 = vmin.f32 %v195_v31, %v196_v30  ;;  %v202_v36 = vmax.f32 %v201_v32, %v196_v30 }
  0x81   : > { %v205_v37 = vsub.f32 %v202_v36, %v198_v35  ;;  %v203_v45 = vperm.slane %v198_v35, 0 }
  0x83   : > { %v206_v38 = vmax.f32 %v205_v37, 1e-30  ;;  %v204_v53 = vsub.f32 %v534_v22, %v203_v45 }
  0x85   : > { %v207_v39 = vperm.slane %v206_v38, 0 }
  0x87   : > { %535 = vrcp.f32 %v207_v39  ;;  %v219_v43 = vand.u32 2147483648, %v207_v39  ;;  %v217_v47 = vand.u32 2147483647, %v207_v39  ;;  %vm213_vm7 = vweird.f32 %v207_v39 }
  0x89   : > { %v220_v52 = vor.u32 1.1754944e-38, %v219_v43  ;;  %vm218_vm10 = vcmp.eq.f32.partialorder %v217_v47, 8.507059e+37 }
  0x8d   : > { %v536_v40 = vpop.eup %535 }
  0x8e   : > { %v209_v41 = vmul.f32 %v536_v40, %v207_v39  ;;  %vm214_vm5 = vweird.f32 %v536_v40 }
  0x8f   : > { %vm215_vm8 = vmor %vm213_vm7, %vm214_vm5 }
  0x90   : > { %v210_v42 = vsub.f32 1.0, %v209_v41 }
  0x92   : > { %v211_v46 = vmul.f32 %v536_v40, %v210_v42 }
  0x94   : > { %v212_v48 = vadd.f32 %v536_v40, %v211_v46 }
  0x96   : > { %v216_v54 = vsel %vm215_vm8, %v536_v40, %v212_v48 }
  0x97   : > { %v221_v57 = vsel %vm218_vm10, %v220_v52, %v216_v54 }
  0x98   : > { %v222_v58 = vmul.f32 %v221_v57, %v204_v53 }
  0x9a   : > { %v231_v60 = vsel %vm226_vm11, %v444_v56, %v222_v58 }
  0x9b   : > { %v239_v61 = vsel %vm223_vm12, %v236_v59, %v231_v60 }
  0x9c   : > { %v242_v62 = vsel %vm228_vm13, %v239_v61, 0.0 }
  0x9d   : > { %243 = vxpose.xlu0.b32.start.end [1/1] (short) (narrow) %v242_v62, 16 }
 0x104   : > { %520 = vset.pattern.permute.xlu0 %v636_v63 }
 0x141   : > { %v259_v0 = vpop.trf.xlu0 }
 0x142   : > { %303 = vperm.xlu2 %522, %v259_v0   ;;  %290 = vperm.xlu1 %521, %v259_v0  }
 0x143   : > { %278 = vperm.xlu0 %520, %v259_v0  }
 0x149   : > { %v260_v1 = vpop.trf.xlu0 }
 0x14a   : > { %523 = vset.pattern.permute.xlu2 %v637_v2  ;;  %524 = vset.pattern.permute.xlu1 %v636_v63 }
 0x14b   : > { %316 = vperm.xlu2 %523, %v259_v0   ;;  %283 = vperm.xlu1 %524, %v260_v1  }
 0x14c   : > { %530 = vset.pattern.permute.xlu0 %v638_v3 }
 0x153   : > { %525 = vset.pattern.permute.xlu2 %v634_v34  ;;  %526 = vset.pattern.permute.xlu1 %v633_v33 }
 0x154   : > { %294 = vperm.xlu2 %525, %v260_v1   ;;  %307 = vperm.xlu1 %526, %v260_v1  }
 0x15c   : > { %528 = vset.pattern.permute.xlu2 %v638_v3  ;;  %527 = vset.pattern.permute.xlu1 %v637_v2 }
 0x15d   : > { %329 = vperm.xlu2 %528, %v259_v0   ;;  %320 = vperm.xlu1 %527, %v260_v1  }
 0x165   : > { %529 = vset.pattern.permute.xlu1 %v638_v3 }
 0x166   : > { %333 = vperm.xlu1 %529, %v260_v1  }
 0x19c   : > { %v304_v4 = vpop.permute.xlu2 %303 }
 0x19d   : > { %v311_v16 = vmul.f32 %v310_v10, %v304_v4 }
 0x1a5   : > { %v317_v5 = vpop.permute.xlu2 %316 }
 0x1a6   : > { %v324_v20 = vmul.f32 %v323_v14, %v317_v5 }
 0x1ae   : > { %v295_v6 = vpop.permute.xlu2 %294 }
 0x1af   : > { %v299_v29 = vmul.f32 %v297_v9, %v295_v6 }
 0x1b4   : > { %v291_v11 = vpop.permute.xlu1 %290 }
 0x1b5   : > { %v298_v12 = vmul.f32 %v297_v9, %v291_v11  ;;  %v279_v13 = vpop.permute.xlu0 %278 }
 0x1b6   : > { %v287_v15 = vmul.f32 %v286_v8, %v279_v13 }
 0x1b7   : > { %v330_v19 = vpop.permute.xlu2 %329 }
 0x1b8   : > { %v300_v17 = vadd.f32 %v298_v12, %v287_v15  ;;  %v337_v23 = vmul.f32 %v336_v18, %v330_v19 }
 0x1ba   : > { %v313_v21 = vadd.f32 %v311_v16, %v300_v17 }
 0x1bc   : > { %v326_v22 = vadd.f32 %v324_v20, %v313_v21 }
 0x1bd   : > { %v284_v24 = vpop.permute.xlu1 %283 }
 0x1be   : > { %v339_v25 = vadd.f32 %v337_v23, %v326_v22  ;;  %v288_v28 = vmul.f32 %v286_v8, %v284_v24 }
 0x1c0   : > { %342 = vst.msk [vmem:[%s138_s19] sm:$0xff] %vm341_vm14, %v339_v25  ;;  %v301_v31 = vadd.f32 %v299_v29, %v288_v28 }
 0x1c6   : > { %v308_v26 = vpop.permute.xlu1 %307 }
 0x1c7   : > { %v312_v30 = vmul.f32 %v310_v10, %v308_v26 }
 0x1c9   : > { %v314_v33 = vadd.f32 %v312_v30, %v301_v31 }
 0x1cf   : > { %v321_v27 = vpop.permute.xlu1 %320 }
 0x1d0   : > { %v325_v32 = vmul.f32 %v323_v14, %v321_v27 }
 0x1d2   : > { %v327_v35 = vadd.f32 %v325_v32, %v314_v33 }
 0x1d8   : > { %v334_v34 = vpop.permute.xlu1 %333 }
 0x1d9   : > { %v338_v36 = vmul.f32 %v336_v18, %v334_v34 }
 0x1db   : > { %v340_v37 = vadd.f32 %v338_v36, %v327_v35 }
 0x1dd   : > { %343 = vst.msk [vmem:[%s138_s19 + $0x8] sm:$0xff] %vm341_vm14, %v340_v37 }
 0x1de   : > { %576 = shalt.err (!%p573_p6)
}
 0x1df   : > { %s639_s9 = smov 128   ;;  %s640_s10 = smov 8  }
 0x1e0   : > { %455 = dma.vmem_to_hbm [thread:$0]  (%p699_p4), %s359_s28, 256, %s361_s29, %s345_s16, %s639_s9, %s639_s9, %s640_s10  }
 0x1e1 PF: > { %p461_p7 = scmp.ge.s32.totalorder %s629_s18, 2  ;;  %s375_s11 = sand.u32 1, %s609_s13  }
 0x1e2   : > { %s376_s12 = scalar_lea.sflag [#allocation5], %s375_s11 }
 0x1e3   : > { %p458_p9 = pnand %p461_p7, %p706_p8 }
 0x1e5   : > { %p459_p10 = pneg %p458_p9 }
 0x1e7   : > { %604 = dma.done.wait (%p459_p10), %s376_s12, 256  }
 0x1e8   : > { %606 = vsyncadd (%p459_p10), %s376_s12, 4294967040  ;;  %s23_s18 = sadd.s32 1, %s629_s18   ;;  %s780_s13 = smov %s613_s14 }
 0x1e9   : > { %p20_p11 = scmp.ge.s32.totalorder %s23_s18, 4   ;;  %s781_s14 = smov %s617_s15 }
 0x1ea   : > { %s782_s15 = smov %s712_s25  ;;  %s783_s16 = smov %s625_s17 }
 0x1eb   : > { %s784_s17 = smov %s786_s20  ;;  %22 = sbr.rel (!%p20_p11) target bundleno = 10 (0xa), region = 59 }
 0x1f0   :  { %382 = vsyncpa [#allocation5], 1 }
 0x1f1   :  { %384 = vsyncpa [#allocation5 + $0x1], 1 }

</bundles_post_ra>
